<compile_context>
chip_gen: v7x
topology: tpu7x:2x2x1
jax: 0.10.0
libtpu: 0.0.40
codegen_flags: <defaults>
</compile_context>

<pallas_src>
import jax
import jax.numpy as jnp
from jax.experimental import pallas as pl
from jax.experimental.pallas import tpu as pltpu

IN_FEAT = 2    # GCNConv in_channels
GCN_OUT = 2    # GCNConv out_channels == RNN input_size
HIDDEN = 3     # RNN hidden_size
OUT_DIM = 1    # Linear out_features

# Packed-parameter slab layout (all blocks start at column 0):
#   rows 0:2   Wg   right-multiply form        [IN_FEAT, GCN_OUT]
#   row  2     bg                              [1, GCN_OUT]
#   rows 3:5   Wih^T                           [GCN_OUT, HIDDEN]
#   row  5     bih + bhh (folded RNN biases)   [1, HIDDEN]
#   rows 6:9   Whh^T                           [HIDDEN, HIDDEN]
#   row  9     Wl (torch row layout)           [1, HIDDEN]
#   row 10     bl                              [1, OUT_DIM]
P_ROWS, P_COLS = 16, 128


def graph_seq_kernel(a_ref, x_ref, p_ref, o_ref, xih_ref):
    # ---- static slices of the packed parameter slab ----
    wg = p_ref[0:2, 0:GCN_OUT]          # [2, 2]
    bg = p_ref[2:3, 0:GCN_OUT]          # [1, 2]
    wih = p_ref[3:5, 0:HIDDEN]          # [2, 3]
    bias = p_ref[5:6, 0:HIDDEN]         # [1, 3]  (bih + bhh)
    whh = p_ref[6:9, 0:HIDDEN]          # [3, 3]  (Whh^T)
    wl = p_ref[9:10, 0:HIDDEN]          # [1, 3]
    bl = p_ref[10:11, 0:OUT_DIM]        # [1, 1]

    # ---- GCN + hoisted RNN input projection (three small MXU matmuls, done once) ----
    xw = jnp.dot(x_ref[...], wg, preferred_element_type=jnp.float32)        # [L, 2]
    seq = jnp.dot(a_ref[...], xw, preferred_element_type=jnp.float32) + bg  # [L, 2]
    xih = jnp.dot(seq, wih, preferred_element_type=jnp.float32) + bias      # [L, 3]
    xih_ref[...] = xih

    # ---- RNN recurrence: h_t = tanh(xih[t] + h_{t-1} @ Whh^T), h_0 = 0 ----
    # Unrolled (L is static); the 3x3 contraction is done on the VPU as
    # broadcast-mul-adds so no padded MXU push sits on the serial h->h chain.
    L = xih_ref.shape[0]
    w0 = whh[0:1, :]
    w1 = whh[1:2, :]
    w2 = whh[2:3, :]
    h = jnp.zeros((1, HIDDEN), jnp.float32)
    for t in range(L):
        x_t = xih_ref[t:t + 1, :]                                   # [1, 3] (static slice)
        hh = h[:, 0:1] * w0 + h[:, 1:2] * w1 + h[:, 2:3] * w2       # h @ Whh^T on VPU
        h = jnp.tanh(x_t + hh)

    # ---- ReLU -> Linear(3, 1) -> Sigmoid (elementwise + lane reduce, no matmul) ----
    h = jnp.maximum(h, 0.0)
    logit = jnp.sum(h * wl, axis=-1, keepdims=True) + bl            # [1, 1]
    o_ref[...] = jax.nn.sigmoid(logit)


def graph_sequence_model(a_hat, x, packed_params):
    """a_hat: [L, L] block-diag normalized adjacency; x: [L, IN_FEAT]."""
    L = x.shape[0]
    vmem = pl.BlockSpec(memory_space=pltpu.MemorySpace.VMEM)
    return pl.pallas_call(
        graph_seq_kernel,
        out_shape=jax.ShapeDtypeStruct((1, OUT_DIM), jnp.float32),
        in_specs=[vmem, vmem, vmem],
        out_specs=vmem,
        scratch_shapes=[pltpu.VMEM((L, HIDDEN), jnp.float32)],
    )(a_hat, x, packed_params)


# ---------------------------- plain-JAX glue ----------------------------

def normalized_adj(adj):
    """GCNConv normalization: D^{-1/2} (A + I) D^{-1/2} for one dense adjacency."""
    n = adj.shape[0]
    a_tilde = adj + jnp.eye(n, dtype=adj.dtype)
    deg = a_tilde.sum(axis=1)
    d_inv_sqrt = 1.0 / jnp.sqrt(deg)
    return a_tilde * d_inv_sqrt[:, None] * d_inv_sqrt[None, :]


def block_diag(mats):
    sizes = [m.shape[0] for m in mats]
    total = sum(sizes)
    out = jnp.zeros((total, total), jnp.float32)
    off = 0
    for m, s in zip(mats, sizes):
        out = out.at[off:off + s, off:off + s].set(m)
        off += s
    return out


def init_params(key):
    """Parameters in PyTorch layouts."""
    ks = jax.random.split(key, 8)
    wg_t = 0.5 * jax.random.normal(ks[0], (GCN_OUT, IN_FEAT), jnp.float32)   # gcn weight [out, in]
    bg = 0.1 * jax.random.normal(ks[1], (GCN_OUT,), jnp.float32)
    wih = 0.5 * jax.random.normal(ks[2], (HIDDEN, GCN_OUT), jnp.float32)     # weight_ih_l0
    whh = 0.5 * jax.random.normal(ks[3], (HIDDEN, HIDDEN), jnp.float32)      # weight_hh_l0
    bih = 0.1 * jax.random.normal(ks[4], (HIDDEN,), jnp.float32)
    bhh = 0.1 * jax.random.normal(ks[5], (HIDDEN,), jnp.float32)
    wl = 0.5 * jax.random.normal(ks[6], (OUT_DIM, HIDDEN), jnp.float32)      # linear weight [out, in]
    bl = 0.1 * jax.random.normal(ks[7], (OUT_DIM,), jnp.float32)
    return wg_t, bg, wih, whh, bih, bhh, wl, bl


def pack_params(wg_t, bg, wih, whh, bih, bhh, wl, bl):
    """Pack all weights/biases into one padded (16,128) f32 slab (one DMA)."""
    p = jnp.zeros((P_ROWS, P_COLS), jnp.float32)
    p = p.at[0:2, 0:GCN_OUT].set(wg_t.T)                              # X @ Wg
    p = p.at[2:3, 0:GCN_OUT].set(bg.reshape(1, GCN_OUT))
    p = p.at[3:5, 0:HIDDEN].set(wih.T)                                # x_t @ Wih^T
    p = p.at[5:6, 0:HIDDEN].set((bih + bhh).reshape(1, HIDDEN))       # folded RNN biases
    p = p.at[6:9, 0:HIDDEN].set(whh.T)                                # h @ Whh^T
    p = p.at[9:10, 0:HIDDEN].set(wl.reshape(1, HIDDEN))               # used as sum(h * Wl)
    p = p.at[10:11, 0:OUT_DIM].set(bl.reshape(1, OUT_DIM))
    return p


def reference_forward(a_hat, x, params):
    """Pure-JAX reference of the module forward (for a correctness check)."""
    wg_t, bg, wih, whh, bih, bhh, wl, bl = params
    seq = a_hat @ (x @ wg_t.T) + bg[None, :]
    h = jnp.zeros((HIDDEN,), jnp.float32)
    for t in range(seq.shape[0]):
        h = jnp.tanh(seq[t] @ wih.T + bih + h @ whh.T + bhh)
    h = jnp.maximum(h, 0.0)
    return jax.nn.sigmoid(h @ wl.T + bl).reshape(1, OUT_DIM)


if __name__ == "__main__":
    key = jax.random.PRNGKey(0)
    k_feat, k_adj, k_par = jax.random.split(key, 3)

    num_graphs = 2
    n_nodes = 8  # per graph -> total sequence length L = 16

    # synthetic graphs: node features [N, 2] and symmetric adjacency [N, N] per graph
    xs = jax.random.normal(k_feat, (num_graphs, n_nodes, IN_FEAT), jnp.float32)
    rand_a = jax.random.bernoulli(k_adj, 0.3, (num_graphs, n_nodes, n_nodes)).astype(jnp.float32)
    adjs = jnp.clip(rand_a + jnp.transpose(rand_a, (0, 2, 1)), 0.0, 1.0)
    adjs = adjs * (1.0 - jnp.eye(n_nodes, dtype=jnp.float32))

    # GCN normalization per graph, then block-diag so one matmul covers torch.cat(seq)
    a_hat = block_diag([normalized_adj(adjs[g]) for g in range(num_graphs)])
    x_cat = jnp.concatenate([xs[g] for g in range(num_graphs)], axis=0)  # [L, 2]

    params = init_params(k_par)
    packed = pack_params(*params)

    out = graph_sequence_model(a_hat, x_cat, packed)
    jax.block_until_ready(out)
    assert out.shape == (1, OUT_DIM)

    ref = reference_forward(a_hat, x_cat, params)
    assert jnp.allclose(out, ref, atol=1e-5, rtol=1e-5)

    print("KERNEL_OK")
</pallas_src>

<mosaic_0001>
module attributes {stable_mosaic.version = 11 : i64} {
  func.func @graph_seq_kernel(%arg0: memref<16x16xf32, #tpu.memory_space<vmem>>, %arg1: memref<16x2xf32, #tpu.memory_space<vmem>>, %arg2: memref<16x128xf32, #tpu.memory_space<vmem>>, %arg3: memref<1x1xf32, #tpu.memory_space<vmem>>, %arg4: memref<16x3xf32, #tpu.memory_space<vmem>>) attributes {dimension_semantics = [], scalar_prefetch = 0 : i64, scratch_operands = 1 : i64, tpu.core_type = #tpu.core_type<tc>} {
    %c0 = arith.constant 0 : index
    %c0_0 = arith.constant 0 : index
    %0 = vector.load %arg2[%c0, %c0_0] : memref<16x128xf32, #tpu.memory_space<vmem>>, vector<2x2xf32>
    %c2 = arith.constant 2 : index
    %c0_1 = arith.constant 0 : index
    %1 = vector.load %arg2[%c2, %c0_1] : memref<16x128xf32, #tpu.memory_space<vmem>>, vector<1x2xf32>
    %c3 = arith.constant 3 : index
    %c0_2 = arith.constant 0 : index
    %2 = vector.load %arg2[%c3, %c0_2] : memref<16x128xf32, #tpu.memory_space<vmem>>, vector<2x3xf32>
    %c5 = arith.constant 5 : index
    %c0_3 = arith.constant 0 : index
    %3 = vector.load %arg2[%c5, %c0_3] : memref<16x128xf32, #tpu.memory_space<vmem>>, vector<1x3xf32>
    %c6 = arith.constant 6 : index
    %c0_4 = arith.constant 0 : index
    %4 = vector.load %arg2[%c6, %c0_4] : memref<16x128xf32, #tpu.memory_space<vmem>>, vector<3x3xf32>
    %c9 = arith.constant 9 : index
    %c0_5 = arith.constant 0 : index
    %5 = vector.load %arg2[%c9, %c0_5] : memref<16x128xf32, #tpu.memory_space<vmem>>, vector<1x3xf32>
    %c10 = arith.constant 10 : index
    %c0_6 = arith.constant 0 : index
    %6 = vector.load %arg2[%c10, %c0_6] : memref<16x128xf32, #tpu.memory_space<vmem>>, vector<1x1xf32>
    %c0_7 = arith.constant 0 : index
    %c0_8 = arith.constant 0 : index
    %7 = vector.load %arg1[%c0_7, %c0_8] : memref<16x2xf32, #tpu.memory_space<vmem>>, vector<16x2xf32>
    %cst = arith.constant dense<0.000000e+00> : vector<16x2xf32>
    %8 = tpu.matmul %7, %0, %cst {dimension_numbers = #tpu.dot_dimension_numbers<[1], [0], [0], [1], [0, 0, 1, 1], [], []>} : vector<16x2xf32>, vector<2x2xf32>, vector<16x2xf32> -> vector<16x2xf32>
    %c0_9 = arith.constant 0 : index
    %c0_10 = arith.constant 0 : index
    %9 = vector.load %arg0[%c0_9, %c0_10] : memref<16x16xf32, #tpu.memory_space<vmem>>, vector<16x16xf32>
    %cst_11 = arith.constant dense<0.000000e+00> : vector<16x2xf32>
    %10 = tpu.matmul %9, %8, %cst_11 {dimension_numbers = #tpu.dot_dimension_numbers<[1], [0], [0], [1], [0, 0, 1, 1], [], []>} : vector<16x16xf32>, vector<16x2xf32>, vector<16x2xf32> -> vector<16x2xf32>
    %11 = vector.broadcast %1 : vector<1x2xf32> to vector<16x2xf32>
    %12 = arith.addf %10, %11 : vector<16x2xf32>
    %cst_12 = arith.constant dense<0.000000e+00> : vector<16x3xf32>
    %13 = tpu.matmul %12, %2, %cst_12 {dimension_numbers = #tpu.dot_dimension_numbers<[1], [0], [0], [1], [0, 0, 1, 1], [], []>} : vector<16x2xf32>, vector<2x3xf32>, vector<16x3xf32> -> vector<16x3xf32>
    %14 = vector.broadcast %3 : vector<1x3xf32> to vector<16x3xf32>
    %15 = arith.addf %13, %14 : vector<16x3xf32>
    %c0_13 = arith.constant 0 : index
    %c0_14 = arith.constant 0 : index
    %16 = vector.load %arg4[%c0_13, %c0_14] : memref<16x3xf32, #tpu.memory_space<vmem>>, vector<16x3xf32>
    tpu.vector_store %arg4[%c0_13, %c0_14], %15 {strides = array<i32>} : memref<16x3xf32, #tpu.memory_space<vmem>>, vector<16x3xf32>,
    %17 = vector.extract_strided_slice %4 {offsets = [0, 0], sizes = [1, 3], strides = [1, 1]} : vector<3x3xf32> to vector<1x3xf32>
    %18 = vector.extract_strided_slice %4 {offsets = [1, 0], sizes = [1, 3], strides = [1, 1]} : vector<3x3xf32> to vector<1x3xf32>
    %19 = vector.extract_strided_slice %4 {offsets = [2, 0], sizes = [1, 3], strides = [1, 1]} : vector<3x3xf32> to vector<1x3xf32>
    %cst_15 = arith.constant 0.000000e+00 : f32
    %20 = vector.broadcast %cst_15 : f32 to vector<1x3xf32>
    %c0_16 = arith.constant 0 : index
    %c0_17 = arith.constant 0 : index
    %21 = vector.load %arg4[%c0_16, %c0_17] : memref<16x3xf32, #tpu.memory_space<vmem>>, vector<1x3xf32>
    %22 = vector.extract_strided_slice %20 {offsets = [0, 0], sizes = [1, 1], strides = [1, 1]} : vector<1x3xf32> to vector<1x1xf32>
    %23 = vector.broadcast %22 : vector<1x1xf32> to vector<1x3xf32>
    %24 = arith.mulf %23, %17 : vector<1x3xf32>
    %25 = vector.extract_strided_slice %20 {offsets = [0, 1], sizes = [1, 1], strides = [1, 1]} : vector<1x3xf32> to vector<1x1xf32>
    %26 = vector.broadcast %25 : vector<1x1xf32> to vector<1x3xf32>
    %27 = arith.mulf %26, %18 : vector<1x3xf32>
    %28 = arith.addf %24, %27 : vector<1x3xf32>
    %29 = vector.extract_strided_slice %20 {offsets = [0, 2], sizes = [1, 1], strides = [1, 1]} : vector<1x3xf32> to vector<1x1xf32>
    %30 = vector.broadcast %29 : vector<1x1xf32> to vector<1x3xf32>
    %31 = arith.mulf %30, %19 : vector<1x3xf32>
    %32 = arith.addf %28, %31 : vector<1x3xf32>
    %33 = arith.addf %21, %32 : vector<1x3xf32>
    %34 = math.tanh %33 : vector<1x3xf32>
    %c1 = arith.constant 1 : index
    %c0_18 = arith.constant 0 : index
    %35 = vector.load %arg4[%c1, %c0_18] : memref<16x3xf32, #tpu.memory_space<vmem>>, vector<1x3xf32>
    %36 = vector.extract_strided_slice %34 {offsets = [0, 0], sizes = [1, 1], strides = [1, 1]} : vector<1x3xf32> to vector<1x1xf32>
    %37 = vector.broadcast %36 : vector<1x1xf32> to vector<1x3xf32>
    %38 = arith.mulf %37, %17 : vector<1x3xf32>
    %39 = vector.extract_strided_slice %34 {offsets = [0, 1], sizes = [1, 1], strides = [1, 1]} : vector<1x3xf32> to vector<1x1xf32>
    %40 = vector.broadcast %39 : vector<1x1xf32> to vector<1x3xf32>
    %41 = arith.mulf %40, %18 : vector<1x3xf32>
    %42 = arith.addf %38, %41 : vector<1x3xf32>
    %43 = vector.extract_strided_slice %34 {offsets = [0, 2], sizes = [1, 1], strides = [1, 1]} : vector<1x3xf32> to vector<1x1xf32>
    %44 = vector.broadcast %43 : vector<1x1xf32> to vector<1x3xf32>
    %45 = arith.mulf %44, %19 : vector<1x3xf32>
    %46 = arith.addf %42, %45 : vector<1x3xf32>
    %47 = arith.addf %35, %46 : vector<1x3xf32>
    %48 = math.tanh %47 : vector<1x3xf32>
    %c2_19 = arith.constant 2 : index
    %c0_20 = arith.constant 0 : index
    %49 = vector.load %arg4[%c2_19, %c0_20] : memref<16x3xf32, #tpu.memory_space<vmem>>, vector<1x3xf32>
    %50 = vector.extract_strided_slice %48 {offsets = [0, 0], sizes = [1, 1], strides = [1, 1]} : vector<1x3xf32> to vector<1x1xf32>
    %51 = vector.broadcast %50 : vector<1x1xf32> to vector<1x3xf32>
    %52 = arith.mulf %51, %17 : vector<1x3xf32>
    %53 = vector.extract_strided_slice %48 {offsets = [0, 1], sizes = [1, 1], strides = [1, 1]} : vector<1x3xf32> to vector<1x1xf32>
    %54 = vector.broadcast %53 : vector<1x1xf32> to vector<1x3xf32>
    %55 = arith.mulf %54, %18 : vector<1x3xf32>
    %56 = arith.addf %52, %55 : vector<1x3xf32>
    %57 = vector.extract_strided_slice %48 {offsets = [0, 2], sizes = [1, 1], strides = [1, 1]} : vector<1x3xf32> to vector<1x1xf32>
    %58 = vector.broadcast %57 : vector<1x1xf32> to vector<1x3xf32>
    %59 = arith.mulf %58, %19 : vector<1x3xf32>
    %60 = arith.addf %56, %59 : vector<1x3xf32>
    %61 = arith.addf %49, %60 : vector<1x3xf32>
    %62 = math.tanh %61 : vector<1x3xf32>
    %c3_21 = arith.constant 3 : index
    %c0_22 = arith.constant 0 : index
    %63 = vector.load %arg4[%c3_21, %c0_22] : memref<16x3xf32, #tpu.memory_space<vmem>>, vector<1x3xf32>
    %64 = vector.extract_strided_slice %62 {offsets = [0, 0], sizes = [1, 1], strides = [1, 1]} : vector<1x3xf32> to vector<1x1xf32>
    %65 = vector.broadcast %64 : vector<1x1xf32> to vector<1x3xf32>
    %66 = arith.mulf %65, %17 : vector<1x3xf32>
    %67 = vector.extract_strided_slice %62 {offsets = [0, 1], sizes = [1, 1], strides = [1, 1]} : vector<1x3xf32> to vector<1x1xf32>
    %68 = vector.broadcast %67 : vector<1x1xf32> to vector<1x3xf32>
    %69 = arith.mulf %68, %18 : vector<1x3xf32>
    %70 = arith.addf %66, %69 : vector<1x3xf32>
    %71 = vector.extract_strided_slice %62 {offsets = [0, 2], sizes = [1, 1], strides = [1, 1]} : vector<1x3xf32> to vector<1x1xf32>
    %72 = vector.broadcast %71 : vector<1x1xf32> to vector<1x3xf32>
    %73 = arith.mulf %72, %19 : vector<1x3xf32>
    %74 = arith.addf %70, %73 : vector<1x3xf32>
    %75 = arith.addf %63, %74 : vector<1x3xf32>
    %76 = math.tanh %75 : vector<1x3xf32>
    %c4 = arith.constant 4 : index
    %c0_23 = arith.constant 0 : index
    %77 = vector.load %arg4[%c4, %c0_23] : memref<16x3xf32, #tpu.memory_space<vmem>>, vector<1x3xf32>
    %78 = vector.extract_strided_slice %76 {offsets = [0, 0], sizes = [1, 1], strides = [1, 1]} : vector<1x3xf32> to vector<1x1xf32>
    %79 = vector.broadcast %78 : vector<1x1xf32> to vector<1x3xf32>
    %80 = arith.mulf %79, %17 : vector<1x3xf32>
    %81 = vector.extract_strided_slice %76 {offsets = [0, 1], sizes = [1, 1], strides = [1, 1]} : vector<1x3xf32> to vector<1x1xf32>
    %82 = vector.broadcast %81 : vector<1x1xf32> to vector<1x3xf32>
    %83 = arith.mulf %82, %18 : vector<1x3xf32>
    %84 = arith.addf %80, %83 : vector<1x3xf32>
    %85 = vector.extract_strided_slice %76 {offsets = [0, 2], sizes = [1, 1], strides = [1, 1]} : vector<1x3xf32> to vector<1x1xf32>
    %86 = vector.broadcast %85 : vector<1x1xf32> to vector<1x3xf32>
    %87 = arith.mulf %86, %19 : vector<1x3xf32>
    %88 = arith.addf %84, %87 : vector<1x3xf32>
    %89 = arith.addf %77, %88 : vector<1x3xf32>
    %90 = math.tanh %89 : vector<1x3xf32>
    %c5_24 = arith.constant 5 : index
    %c0_25 = arith.constant 0 : index
    %91 = vector.load %arg4[%c5_24, %c0_25] : memref<16x3xf32, #tpu.memory_space<vmem>>, vector<1x3xf32>
    %92 = vector.extract_strided_slice %90 {offsets = [0, 0], sizes = [1, 1], strides = [1, 1]} : vector<1x3xf32> to vector<1x1xf32>
    %93 = vector.broadcast %92 : vector<1x1xf32> to vector<1x3xf32>
    %94 = arith.mulf %93, %17 : vector<1x3xf32>
    %95 = vector.extract_strided_slice %90 {offsets = [0, 1], sizes = [1, 1], strides = [1, 1]} : vector<1x3xf32> to vector<1x1xf32>
    %96 = vector.broadcast %95 : vector<1x1xf32> to vector<1x3xf32>
    %97 = arith.mulf %96, %18 : vector<1x3xf32>
    %98 = arith.addf %94, %97 : vector<1x3xf32>
    %99 = vector.extract_strided_slice %90 {offsets = [0, 2], sizes = [1, 1], strides = [1, 1]} : vector<1x3xf32> to vector<1x1xf32>
    %100 = vector.broadcast %99 : vector<1x1xf32> to vector<1x3xf32>
    %101 = arith.mulf %100, %19 : vector<1x3xf32>
    %102 = arith.addf %98, %101 : vector<1x3xf32>
    %103 = arith.addf %91, %102 : vector<1x3xf32>
    %104 = math.tanh %103 : vector<1x3xf32>
    %c6_26 = arith.constant 6 : index
    %c0_27 = arith.constant 0 : index
    %105 = vector.load %arg4[%c6_26, %c0_27] : memref<16x3xf32, #tpu.memory_space<vmem>>, vector<1x3xf32>
    %106 = vector.extract_strided_slice %104 {offsets = [0, 0], sizes = [1, 1], strides = [1, 1]} : vector<1x3xf32> to vector<1x1xf32>
    %107 = vector.broadcast %106 : vector<1x1xf32> to vector<1x3xf32>
    %108 = arith.mulf %107, %17 : vector<1x3xf32>
    %109 = vector.extract_strided_slice %104 {offsets = [0, 1], sizes = [1, 1], strides = [1, 1]} : vector<1x3xf32> to vector<1x1xf32>
    %110 = vector.broadcast %109 : vector<1x1xf32> to vector<1x3xf32>
    %111 = arith.mulf %110, %18 : vector<1x3xf32>
    %112 = arith.addf %108, %111 : vector<1x3xf32>
    %113 = vector.extract_strided_slice %104 {offsets = [0, 2], sizes = [1, 1], strides = [1, 1]} : vector<1x3xf32> to vector<1x1xf32>
    %114 = vector.broadcast %113 : vector<1x1xf32> to vector<1x3xf32>
    %115 = arith.mulf %114, %19 : vector<1x3xf32>
    %116 = arith.addf %112, %115 : vector<1x3xf32>
    %117 = arith.addf %105, %116 : vector<1x3xf32>
    %118 = math.tanh %117 : vector<1x3xf32>
    %c7 = arith.constant 7 : index
    %c0_28 = arith.constant 0 : index
    %119 = vector.load %arg4[%c7, %c0_28] : memref<16x3xf32, #tpu.memory_space<vmem>>, vector<1x3xf32>
    %120 = vector.extract_strided_slice %118 {offsets = [0, 0], sizes = [1, 1], strides = [1, 1]} : vector<1x3xf32> to vector<1x1xf32>
    %121 = vector.broadcast %120 : vector<1x1xf32> to vector<1x3xf32>
    %122 = arith.mulf %121, %17 : vector<1x3xf32>
    %123 = vector.extract_strided_slice %118 {offsets = [0, 1], sizes = [1, 1], strides = [1, 1]} : vector<1x3xf32> to vector<1x1xf32>
    %124 = vector.broadcast %123 : vector<1x1xf32> to vector<1x3xf32>
    %125 = arith.mulf %124, %18 : vector<1x3xf32>
    %126 = arith.addf %122, %125 : vector<1x3xf32>
    %127 = vector.extract_strided_slice %118 {offsets = [0, 2], sizes = [1, 1], strides = [1, 1]} : vector<1x3xf32> to vector<1x1xf32>
    %128 = vector.broadcast %127 : vector<1x1xf32> to vector<1x3xf32>
    %129 = arith.mulf %128, %19 : vector<1x3xf32>
    %130 = arith.addf %126, %129 : vector<1x3xf32>
    %131 = arith.addf %119, %130 : vector<1x3xf32>
    %132 = math.tanh %131 : vector<1x3xf32>
    %c8 = arith.constant 8 : index
    %c0_29 = arith.constant 0 : index
    %133 = vector.load %arg4[%c8, %c0_29] : memref<16x3xf32, #tpu.memory_space<vmem>>, vector<1x3xf32>
    %134 = vector.extract_strided_slice %132 {offsets = [0, 0], sizes = [1, 1], strides = [1, 1]} : vector<1x3xf32> to vector<1x1xf32>
    %135 = vector.broadcast %134 : vector<1x1xf32> to vector<1x3xf32>
    %136 = arith.mulf %135, %17 : vector<1x3xf32>
    %137 = vector.extract_strided_slice %132 {offsets = [0, 1], sizes = [1, 1], strides = [1, 1]} : vector<1x3xf32> to vector<1x1xf32>
    %138 = vector.broadcast %137 : vector<1x1xf32> to vector<1x3xf32>
    %139 = arith.mulf %138, %18 : vector<1x3xf32>
    %140 = arith.addf %136, %139 : vector<1x3xf32>
    %141 = vector.extract_strided_slice %132 {offsets = [0, 2], sizes = [1, 1], strides = [1, 1]} : vector<1x3xf32> to vector<1x1xf32>
    %142 = vector.broadcast %141 : vector<1x1xf32> to vector<1x3xf32>
    %143 = arith.mulf %142, %19 : vector<1x3xf32>
    %144 = arith.addf %140, %143 : vector<1x3xf32>
    %145 = arith.addf %133, %144 : vector<1x3xf32>
    %146 = math.tanh %145 : vector<1x3xf32>
    %c9_30 = arith.constant 9 : index
    %c0_31 = arith.constant 0 : index
    %147 = vector.load %arg4[%c9_30, %c0_31] : memref<16x3xf32, #tpu.memory_space<vmem>>, vector<1x3xf32>
    %148 = vector.extract_strided_slice %146 {offsets = [0, 0], sizes = [1, 1], strides = [1, 1]} : vector<1x3xf32> to vector<1x1xf32>
    %149 = vector.broadcast %148 : vector<1x1xf32> to vector<1x3xf32>
    %150 = arith.mulf %149, %17 : vector<1x3xf32>
    %151 = vector.extract_strided_slice %146 {offsets = [0, 1], sizes = [1, 1], strides = [1, 1]} : vector<1x3xf32> to vector<1x1xf32>
    %152 = vector.broadcast %151 : vector<1x1xf32> to vector<1x3xf32>
    %153 = arith.mulf %152, %18 : vector<1x3xf32>
    %154 = arith.addf %150, %153 : vector<1x3xf32>
    %155 = vector.extract_strided_slice %146 {offsets = [0, 2], sizes = [1, 1], strides = [1, 1]} : vector<1x3xf32> to vector<1x1xf32>
    %156 = vector.broadcast %155 : vector<1x1xf32> to vector<1x3xf32>
    %157 = arith.mulf %156, %19 : vector<1x3xf32>
    %158 = arith.addf %154, %157 : vector<1x3xf32>
    %159 = arith.addf %147, %158 : vector<1x3xf32>
    %160 = math.tanh %159 : vector<1x3xf32>
    %c10_32 = arith.constant 10 : index
    %c0_33 = arith.constant 0 : index
    %161 = vector.load %arg4[%c10_32, %c0_33] : memref<16x3xf32, #tpu.memory_space<vmem>>, vector<1x3xf32>
    %162 = vector.extract_strided_slice %160 {offsets = [0, 0], sizes = [1, 1], strides = [1, 1]} : vector<1x3xf32> to vector<1x1xf32>
    %163 = vector.broadcast %162 : vector<1x1xf32> to vector<1x3xf32>
    %164 = arith.mulf %163, %17 : vector<1x3xf32>
    %165 = vector.extract_strided_slice %160 {offsets = [0, 1], sizes = [1, 1], strides = [1, 1]} : vector<1x3xf32> to vector<1x1xf32>
    %166 = vector.broadcast %165 : vector<1x1xf32> to vector<1x3xf32>
    %167 = arith.mulf %166, %18 : vector<1x3xf32>
    %168 = arith.addf %164, %167 : vector<1x3xf32>
    %169 = vector.extract_strided_slice %160 {offsets = [0, 2], sizes = [1, 1], strides = [1, 1]} : vector<1x3xf32> to vector<1x1xf32>
    %170 = vector.broadcast %169 : vector<1x1xf32> to vector<1x3xf32>
    %171 = arith.mulf %170, %19 : vector<1x3xf32>
    %172 = arith.addf %168, %171 : vector<1x3xf32>
    %173 = arith.addf %161, %172 : vector<1x3xf32>
    %174 = math.tanh %173 : vector<1x3xf32>
    %c11 = arith.constant 11 : index
    %c0_34 = arith.constant 0 : index
    %175 = vector.load %arg4[%c11, %c0_34] : memref<16x3xf32, #tpu.memory_space<vmem>>, vector<1x3xf32>
    %176 = vector.extract_strided_slice %174 {offsets = [0, 0], sizes = [1, 1], strides = [1, 1]} : vector<1x3xf32> to vector<1x1xf32>
    %177 = vector.broadcast %176 : vector<1x1xf32> to vector<1x3xf32>
    %178 = arith.mulf %177, %17 : vector<1x3xf32>
    %179 = vector.extract_strided_slice %174 {offsets = [0, 1], sizes = [1, 1], strides = [1, 1]} : vector<1x3xf32> to vector<1x1xf32>
    %180 = vector.broadcast %179 : vector<1x1xf32> to vector<1x3xf32>
    %181 = arith.mulf %180, %18 : vector<1x3xf32>
    %182 = arith.addf %178, %181 : vector<1x3xf32>
    %183 = vector.extract_strided_slice %174 {offsets = [0, 2], sizes = [1, 1], strides = [1, 1]} : vector<1x3xf32> to vector<1x1xf32>
    %184 = vector.broadcast %183 : vector<1x1xf32> to vector<1x3xf32>
    %185 = arith.mulf %184, %19 : vector<1x3xf32>
    %186 = arith.addf %182, %185 : vector<1x3xf32>
    %187 = arith.addf %175, %186 : vector<1x3xf32>
    %188 = math.tanh %187 : vector<1x3xf32>
    %c12 = arith.constant 12 : index
    %c0_35 = arith.constant 0 : index
    %189 = vector.load %arg4[%c12, %c0_35] : memref<16x3xf32, #tpu.memory_space<vmem>>, vector<1x3xf32>
    %190 = vector.extract_strided_slice %188 {offsets = [0, 0], sizes = [1, 1], strides = [1, 1]} : vector<1x3xf32> to vector<1x1xf32>
    %191 = vector.broadcast %190 : vector<1x1xf32> to vector<1x3xf32>
    %192 = arith.mulf %191, %17 : vector<1x3xf32>
    %193 = vector.extract_strided_slice %188 {offsets = [0, 1], sizes = [1, 1], strides = [1, 1]} : vector<1x3xf32> to vector<1x1xf32>
    %194 = vector.broadcast %193 : vector<1x1xf32> to vector<1x3xf32>
    %195 = arith.mulf %194, %18 : vector<1x3xf32>
    %196 = arith.addf %192, %195 : vector<1x3xf32>
    %197 = vector.extract_strided_slice %188 {offsets = [0, 2], sizes = [1, 1], strides = [1, 1]} : vector<1x3xf32> to vector<1x1xf32>
    %198 = vector.broadcast %197 : vector<1x1xf32> to vector<1x3xf32>
    %199 = arith.mulf %198, %19 : vector<1x3xf32>
    %200 = arith.addf %196, %199 : vector<1x3xf32>
    %201 = arith.addf %189, %200 : vector<1x3xf32>
    %202 = math.tanh %201 : vector<1x3xf32>
    %c13 = arith.constant 13 : index
    %c0_36 = arith.constant 0 : index
    %203 = vector.load %arg4[%c13, %c0_36] : memref<16x3xf32, #tpu.memory_space<vmem>>, vector<1x3xf32>
    %204 = vector.extract_strided_slice %202 {offsets = [0, 0], sizes = [1, 1], strides = [1, 1]} : vector<1x3xf32> to vector<1x1xf32>
    %205 = vector.broadcast %204 : vector<1x1xf32> to vector<1x3xf32>
    %206 = arith.mulf %205, %17 : vector<1x3xf32>
    %207 = vector.extract_strided_slice %202 {offsets = [0, 1], sizes = [1, 1], strides = [1, 1]} : vector<1x3xf32> to vector<1x1xf32>
    %208 = vector.broadcast %207 : vector<1x1xf32> to vector<1x3xf32>
    %209 = arith.mulf %208, %18 : vector<1x3xf32>
    %210 = arith.addf %206, %209 : vector<1x3xf32>
    %211 = vector.extract_strided_slice %202 {offsets = [0, 2], sizes = [1, 1], strides = [1, 1]} : vector<1x3xf32> to vector<1x1xf32>
    %212 = vector.broadcast %211 : vector<1x1xf32> to vector<1x3xf32>
    %213 = arith.mulf %212, %19 : vector<1x3xf32>
    %214 = arith.addf %210, %213 : vector<1x3xf32>
    %215 = arith.addf %203, %214 : vector<1x3xf32>
    %216 = math.tanh %215 : vector<1x3xf32>
    %c14 = arith.constant 14 : index
    %c0_37 = arith.constant 0 : index
    %217 = vector.load %arg4[%c14, %c0_37] : memref<16x3xf32, #tpu.memory_space<vmem>>, vector<1x3xf32>
    %218 = vector.extract_strided_slice %216 {offsets = [0, 0], sizes = [1, 1], strides = [1, 1]} : vector<1x3xf32> to vector<1x1xf32>
    %219 = vector.broadcast %218 : vector<1x1xf32> to vector<1x3xf32>
    %220 = arith.mulf %219, %17 : vector<1x3xf32>
    %221 = vector.extract_strided_slice %216 {offsets = [0, 1], sizes = [1, 1], strides = [1, 1]} : vector<1x3xf32> to vector<1x1xf32>
    %222 = vector.broadcast %221 : vector<1x1xf32> to vector<1x3xf32>
    %223 = arith.mulf %222, %18 : vector<1x3xf32>
    %224 = arith.addf %220, %223 : vector<1x3xf32>
    %225 = vector.extract_strided_slice %216 {offsets = [0, 2], sizes = [1, 1], strides = [1, 1]} : vector<1x3xf32> to vector<1x1xf32>
    %226 = vector.broadcast %225 : vector<1x1xf32> to vector<1x3xf32>
    %227 = arith.mulf %226, %19 : vector<1x3xf32>
    %228 = arith.addf %224, %227 : vector<1x3xf32>
    %229 = arith.addf %217, %228 : vector<1x3xf32>
    %230 = math.tanh %229 : vector<1x3xf32>
    %c15 = arith.constant 15 : index
    %c0_38 = arith.constant 0 : index
    %231 = vector.load %arg4[%c15, %c0_38] : memref<16x3xf32, #tpu.memory_space<vmem>>, vector<1x3xf32>
    %232 = vector.extract_strided_slice %230 {offsets = [0, 0], sizes = [1, 1], strides = [1, 1]} : vector<1x3xf32> to vector<1x1xf32>
    %233 = vector.broadcast %232 : vector<1x1xf32> to vector<1x3xf32>
    %234 = arith.mulf %233, %17 : vector<1x3xf32>
    %235 = vector.extract_strided_slice %230 {offsets = [0, 1], sizes = [1, 1], strides = [1, 1]} : vector<1x3xf32> to vector<1x1xf32>
    %236 = vector.broadcast %235 : vector<1x1xf32> to vector<1x3xf32>
    %237 = arith.mulf %236, %18 : vector<1x3xf32>
    %238 = arith.addf %234, %237 : vector<1x3xf32>
    %239 = vector.extract_strided_slice %230 {offsets = [0, 2], sizes = [1, 1], strides = [1, 1]} : vector<1x3xf32> to vector<1x1xf32>
    %240 = vector.broadcast %239 : vector<1x1xf32> to vector<1x3xf32>
    %241 = arith.mulf %240, %19 : vector<1x3xf32>
    %242 = arith.addf %238, %241 : vector<1x3xf32>
    %243 = arith.addf %231, %242 : vector<1x3xf32>
    %244 = math.tanh %243 : vector<1x3xf32>
    %cst_39 = arith.constant 0.000000e+00 : f32
    %245 = vector.broadcast %cst_39 : f32 to vector<1x3xf32>
    %246 = arith.maximumf %244, %245 : vector<1x3xf32>
    %247 = arith.mulf %246, %5 : vector<1x3xf32>
    %cst_40 = arith.constant dense<0.000000e+00> : vector<1xf32>
    %248 = vector.multi_reduction <add>, %247, %cst_40 [1] : vector<1x3xf32> to vector<1xf32>
    %249 = vector.shape_cast %248 : vector<1xf32> to vector<1x1xf32>
    %250 = arith.addf %249, %6 : vector<1x1xf32>
    %251 = arith.negf %250 : vector<1x1xf32>
    %252 = math.exp %251 : vector<1x1xf32>
    %cst_41 = arith.constant 1.000000e+00 : f32
    %253 = vector.broadcast %cst_41 : f32 to vector<1x1xf32>
    %254 = arith.addf %253, %252 : vector<1x1xf32>
    %255 = arith.divf %253, %254 : vector<1x1xf32>
    %c0_42 = arith.constant 0 : index
    %c0_43 = arith.constant 0 : index
    %256 = vector.load %arg3[%c0_42, %c0_43] : memref<1x1xf32, #tpu.memory_space<vmem>>, vector<1x1xf32>
    tpu.vector_store %arg3[%c0_42, %c0_43], %255 {strides = array<i32>} : memref<1x1xf32, #tpu.memory_space<vmem>>, vector<1x1xf32>,
    return
  }
}

</mosaic_0001>

<bundles_post_ra>
// kernel: tpu_custom_call.1
= control target key start
LH: loop header
LB: loop body
LE: loop exit
PB: predicated region body
PF: predicated region fallthrough
CT: control target
= control target key end

     0   :  { %8 = vsyncpa [#allocation4], 0  ;;  %s998_s0 = inlined_call_operand.vmem [shape: f32[16,16], index: 0, kind: input, shape index: {}]   ;;  %s999_s1 = inlined_call_operand.vmem [shape: f32[16,2], index: 1, kind: input, shape index: {}]   ;;  %s1000_s2 = inlined_call_operand.hbm [shape: f32[16,128], index: 2, kind: input, shape index: {}]   ;;  %s1001_s3 = inlined_call_operand.hbm [shape: f32[1,1], index: 3, kind: output, shape index: {}]  }
   0x1   :  { %9 = vsyncpa [#allocation5], 0  ;;  %s835_s12 = smov [#allocation3]   ;;  %s787_s16 = scalar_lea.hbm %s1000_s2, 256 }
   0x2   :  { %s19_s13 = sshll.u32 %s835_s12, 4  ;;  %p788_p0 = scmp.ne.s32.totalorder %s1000_s2, %s787_s16  ;;  %s20_s13 = int_to_ptr.vmem [resolvable:$true] %s19_s13 }
   0x3   :  { %p791_p1 = scmp.lt.u32.totalorder %s787_s16, %s1000_s2 }
   0x5   :  { %p793_p2 = pnand %p791_p1, %p788_p0 }
   0x7   :  { %796 = shalt.err (!%p793_p2)
}
   0x8   :  { %s797_s21 = scalar_lea.vmem %s20_s13, 256  ;;  %p802_p4 = scmp.lt.s32.totalorder %s20_s13, %s20_s13 }
   0x9   :  { %p798_p3 = scmp.ne.s32.totalorder %s20_s13, %s797_s21  ;;  %p803_p5 = scmp.lt.s32.totalorder %s797_s21, %s797_s21 }
   0xb   :  { %p804_p6 = por %p803_p5, %p802_p4 }
   0xd   :  { %p805_p7 = pnand %p804_p6, %p798_p3 }
   0xf   :  { %808 = shalt.err (!%p805_p7)
}
  0x10   :  { %s836_s22 = smov 128   ;;  %s837_s23 = smov 8  }
  0x11   :  { %25 = dma.hbm_to_vmem [thread:$0]  %s1000_s2, 256, %s20_s13, [#allocation4], %s836_s22, %s836_s22, %s837_s23  }
  0x12   :  { %831 = dma.done.wait [#allocation4], 256  }
  0x13   :  { %832 = vsyncadd [#allocation4], 4294967040  ;;  %vm45_vm0 = vcmask 1041408   ;;  %vm38_vm1 = vcmask 15360   ;;  %v29_v0 = vld [vmem:[#allocation3] sm:$0x3] }
  0x14   :  { %v36_v1 = vld [vmem:[%s999_s1] sm:$0xff]  ;;  %v37_v2 = vld [vmem:[%s999_s1 + $0x8] sm:$0xff]  ;;  %685 = vmatprep.subr.msk.mxu0 %vm45_vm0, %v29_v0  ;;  %vm130_vm2 = vcmask 130048   ;;  %v31_v8 = vld [vmem:[#allocation3 + $0x3] sm:$0x3]  ;;  %v838_v14 = vmov 2  }
  0x15   :  { %687 = vmatprep.mubr.msk.f32.mxu0 %vm38_vm1, %v36_v1  ;;  %686 = vmatpush3.msk.msra.mxu0 %vm45_vm0, %v29_v0  ;;  %v124_v3 = vld [vmem:[%s998_s0] sm:$0xff]  ;;  %v125_v7 = vld [vmem:[%s998_s0 + $0x8] sm:$0xff]  ;;  %v667_v9 = vld [vmem:[#allocation3 + $0x2] ss:$0 sm:$0xff]  ;;  %v839_v15 = vmov 0   ;;  %vm300_vm3 = vcmask 23552  }
  0x16   :  { %688 = vmatmul.mubr.msk.f32.vlgmr.msra.gmra.mrb[0].mxu0 %vm38_vm1, %v37_v2  ;;  %694 = vmatprep.mubr.msk.f32.mxu1 %vm130_vm2, %v124_v3  ;;  %v896_v16 = vld [vmem:[#allocation3 + $0x6] sm:$0x7]  ;;  %v670_v18 = vld [vmem:[#allocation3 + $0x5] ss:$0 sm:$0xff]  ;;  %v840_v30 = vmov 1   ;;  %vm636_vm4 = vcmask 16384  }
  0x17   :  { %697 = vmatprep.subr.msk.mxu0 %vm45_vm0, %v31_v8  ;;  %715 = vset.pattern.permute.xlu1 %v838_v14  ;;  %v304_v17 = vmul.f32 0.0, %v896_v16  ;;  %v903_v32 = vrot.slane %v896_v16, 1  ;;  %v906_v33 = vrot.slane %v896_v16, 2  ;;  %s841_s0 = smov [#allocation6]   ;;  %vm647_vm5 = vcmask 0  }
  0x18   :  { %698 = vmatpush3.msk.msra.mxu0 %vm45_vm0, %v31_v8  ;;  %713 = vset.pattern.permute.xlu0 %v839_v15  ;;  %s655_s5 = sshll.u32 %s841_s0, 4  ;;  %s656_s5 = int_to_ptr.vmem [resolvable:$true] %s655_s5 }
  0x19   :  { %v306_v20 = vrot.slane %v304_v17, 1  ;;  %v309_v25 = vrot.slane %v304_v17, 2  ;;  %s809_s6 = scalar_lea.vmem %s656_s5, 16  ;;  %s813_s7 = scalar_lea.vmem %s656_s5, 32 }
  0x1a   :  { %p810_p8 = scmp.ne.s32.totalorder %s656_s5, %s809_s6  ;;  %p814_p9 = scmp.lt.s32.totalorder %s656_s5, %s656_s5 }
  0x1b   :  { %v308_v24 = vadd.f32 %v306_v20, %v304_v17  ;;  %p815_p10 = scmp.lt.s32.totalorder %s813_s7, %s809_s6 }
  0x1d   :  { %v311_v26 = vadd.f32 %v309_v25, %v308_v24  ;;  %p816_p11 = por %p815_p10, %p814_p9 }
  0x1f   :  { %p817_p12 = pnand %p816_p11, %p810_p8 }
  0xe9   :  { %v689_v4 = vpop.f32.mrb[0].mxu0 }
  0xea   :  { %v115_v5 = vpop.f32.mrb[1].mxu0 }
  0xeb   :  { %v702_v6 = vpack.c.bf16 %v689_v4, %v115_v5 }
  0xed   :  { %703 = vmatprep.subr.bf16.mxu1 %v702_v6 }
  0xee   :  { %705 = vmatpush3.bf16.msra.mxu1 %v702_v6 }
  0xf1   :  { %695 = vmatmul.mubr.msk.f32.vlgmr.msra.gmra.mrb[0].mxu1 %vm130_vm2, %v125_v7 }
 0x1c4   :  { %v696_v10 = vpop.f32.mrb[0].mxu1 }
 0x1c5   :  { %v203_v11 = vpop.f32.mrb[1].mxu1  ;;  %v209_v13 = vadd.f32 %v696_v10, %v667_v9 }
 0x1c6   :  { %v204_v12 = vadd.f32 %v667_v9, %v203_v11 }
 0x1c8   :  { %699 = vmatprep.mubr.msk.f32.mxu0 %vm38_vm1, %v204_v12 }
 0x1c9   :  { %700 = vmatmul.mubr.msk.f32.vlgmr.msra.gmra.mrb[2].mxu0 %vm38_vm1, %v209_v13 }
 0x29c   :  { %v701_v19 = vpop.f32.mrb[2].mxu0 }
 0x29d   :  { %v297_v21 = vadd.f32 %v701_v19, %v670_v18  ;;  %v291_v22 = vpop.f32.mrb[3].mxu0 }
 0x29e   :  { %v292_v23 = vadd.f32 %v670_v18, %v291_v22 }
 0x29f   :  { %302 = vst.msk [vmem:[#allocation2 + $0x8] sm:$0xff] %vm300_vm3, %v297_v21 }
 0x2a0   :  { %301 = vst.msk [vmem:[#allocation2] sm:$0xff] %vm300_vm3, %v292_v23 }
 0x2a7   :  { %v303_v27 = vld [vmem:[#allocation2] sm:$0x1]  ;;  %v314_v41 = vld [vmem:[#allocation2 + $0x1] sm:$0x1]  ;;  %v340_v52 = vld [vmem:[#allocation2 + $0x2] sm:$0x1] }
 0x2a8   :  { %v312_v28 = vadd.f32 %v311_v26, %v303_v27  ;;  %v361_v63 = vld [vmem:[#allocation2 + $0x3] sm:$0x1]  ;;  %v382_v10 = vld [vmem:[#allocation2 + $0x4] sm:$0x1]  ;;  %v403_v24 = vld [vmem:[#allocation2 + $0x5] sm:$0x1] }
 0x2aa   :  { %751 = vtanh.f32 %v312_v28 }
 0x2b4   :  { %v752_v29 = vpop.eup %751 }
 0x2b5   :  { %331 = vperm.xlu1 %715, %v752_v29   ;;  %317 = vperm.xlu0 %713, %v752_v29  }
 0x2b9   :  { %714 = vset.pattern.permute.xlu0 %v840_v30  ;;  %716 = vset.pattern.permute.xlu1 %v839_v15 }
 0x2ba   :  { %322 = vperm.xlu0 %714, %v752_v29  }
 0x2be   :  { %718 = vset.pattern.permute.xlu0 %v838_v14 }
 0x334   :  { %v318_v31 = vpop.permute.xlu0 %317  ;;  %v332_v34 = vpop.permute.xlu1 %331 }
 0x335   :  { %v320_v36 = vmul.f32 %v318_v31, %v896_v16  ;;  %v336_v38 = vmul.f32 %v906_v33, %v332_v34 }
 0x339   :  { %v323_v35 = vpop.permute.xlu0 %322 }
 0x33a   :  { %v328_v37 = vmul.f32 %v903_v32, %v323_v35 }
 0x33c   :  { %v329_v39 = vadd.f32 %v328_v37, %v320_v36 }
 0x33e   :  { %v337_v40 = vadd.f32 %v336_v38, %v329_v39  ;;  %v424_v38 = vld [vmem:[#allocation2 + $0x6] sm:$0x1] }
 0x340   :  { %v338_v42 = vadd.f32 %v337_v40, %v314_v41 }
 0x342   :  { %753 = vtanh.f32 %v338_v42 }
 0x34c   :  { %v754_v43 = vpop.eup %753 }
 0x34d   :  { %354 = vperm.xlu0 %718, %v754_v43   ;;  %343 = vperm.xlu1 %716, %v754_v43  }
 0x351   :  { %717 = vset.pattern.permute.xlu1 %v840_v30 }
 0x352   :  { %348 = vperm.xlu1 %717, %v754_v43  }
 0x356   :  { %719 = vset.pattern.permute.xlu1 %v839_v15 }
 0x3cc   :  { %v344_v44 = vpop.permute.xlu1 %343  ;;  %v355_v45 = vpop.permute.xlu0 %354 }
 0x3cd   :  { %v346_v47 = vmul.f32 %v344_v44, %v896_v16  ;;  %v357_v49 = vmul.f32 %v355_v45, %v906_v33 }
 0x3d1   :  { %v349_v46 = vpop.permute.xlu1 %348 }
 0x3d2   :  { %v351_v48 = vmul.f32 %v349_v46, %v903_v32 }
 0x3d4   :  { %v352_v50 = vadd.f32 %v351_v48, %v346_v47 }
 0x3d6   :  { %v358_v51 = vadd.f32 %v357_v49, %v352_v50  ;;  %v445_v49 = vld [vmem:[#allocation2 + $0x7] sm:$0x1] }
 0x3d8   :  { %v359_v53 = vadd.f32 %v358_v51, %v340_v52 }
 0x3da   :  { %755 = vtanh.f32 %v359_v53 }
 0x3e4   :  { %v756_v54 = vpop.eup %755 }
 0x3e5   :  { %375 = vperm.xlu0 %718, %v756_v54   ;;  %364 = vperm.xlu1 %719, %v756_v54  }
 0x3e9   :  { %720 = vset.pattern.permute.xlu1 %v840_v30  ;;  %722 = vset.pattern.permute.xlu0 %v840_v30 }
 0x3ea   :  { %369 = vperm.xlu1 %720, %v756_v54  }
 0x3ee   :  { %721 = vset.pattern.permute.xlu1 %v839_v15 }
 0x464   :  { %v365_v55 = vpop.permute.xlu1 %364  ;;  %v376_v56 = vpop.permute.xlu0 %375 }
 0x465   :  { %v367_v58 = vmul.f32 %v365_v55, %v896_v16  ;;  %v378_v60 = vmul.f32 %v376_v56, %v906_v33 }
 0x469   :  { %v370_v57 = vpop.permute.xlu1 %369 }
 0x46a   :  { %v372_v59 = vmul.f32 %v370_v57, %v903_v32 }
 0x46c   :  { %v373_v61 = vadd.f32 %v372_v59, %v367_v58 }
 0x46e   :  { %v379_v62 = vadd.f32 %v378_v60, %v373_v61  ;;  %v466_v60 = vld [vmem:[#allocation2 + $0x8] sm:$0x1] }
 0x470   :  { %v380_v0 = vadd.f32 %v379_v62, %v361_v63 }
 0x472   :  { %757 = vtanh.f32 %v380_v0 }
 0x47c   :  { %v758_v1 = vpop.eup %757 }
 0x47d   :  { %390 = vperm.xlu0 %722, %v758_v1   ;;  %385 = vperm.xlu1 %721, %v758_v1  }
 0x481   :  { %723 = vset.pattern.permute.xlu1 %v838_v14 }
 0x482   :  { %396 = vperm.xlu1 %723, %v758_v1  }
 0x486   :  { %724 = vset.pattern.permute.xlu1 %v839_v15 }
 0x4fc   :  { %v391_v2 = vpop.permute.xlu0 %390  ;;  %v386_v3 = vpop.permute.xlu1 %385 }
 0x4fd   :  { %v393_v4 = vmul.f32 %v391_v2, %v903_v32  ;;  %v388_v5 = vmul.f32 %v386_v3, %v896_v16 }
 0x4ff   :  { %v394_v7 = vadd.f32 %v393_v4, %v388_v5 }
 0x501   :  { %v397_v6 = vpop.permute.xlu1 %396 }
 0x502   :  { %v399_v8 = vmul.f32 %v397_v6, %v906_v33 }
 0x504   :  { %v400_v9 = vadd.f32 %v399_v8, %v394_v7  ;;  %v487_v7 = vld [vmem:[#allocation2 + $0x9] sm:$0x1] }
 0x506   :  { %v401_v11 = vadd.f32 %v400_v9, %v382_v10 }
 0x508   :  { %759 = vtanh.f32 %v401_v11 }
 0x512   :  { %v760_v12 = vpop.eup %759 }
 0x513   :  { %411 = vperm.xlu0 %722, %v760_v12   ;;  %406 = vperm.xlu1 %724, %v760_v12  }
 0x517   :  { %725 = vset.pattern.permute.xlu1 %v838_v14  ;;  %726 = vset.pattern.permute.xlu0 %v839_v15 }
 0x518   :  { %417 = vperm.xlu1 %725, %v760_v12  }
 0x51c   :  { %727 = vset.pattern.permute.xlu1 %v840_v30 }
 0x592   :  { %v412_v13 = vpop.permute.xlu0 %411  ;;  %v407_v17 = vpop.permute.xlu1 %406 }
 0x593   :  { %v414_v18 = vmul.f32 %v412_v13, %v903_v32  ;;  %v409_v19 = vmul.f32 %v407_v17, %v896_v16 }
 0x595   :  { %v415_v21 = vadd.f32 %v414_v18, %v409_v19 }
 0x597   :  { %v418_v20 = vpop.permute.xlu1 %417 }
 0x598   :  { %v420_v22 = vmul.f32 %v418_v20, %v906_v33 }
 0x59a   :  { %v421_v23 = vadd.f32 %v420_v22, %v415_v21  ;;  %v508_v21 = vld [vmem:[#allocation2 + $0xa] sm:$0x1] }
 0x59c   :  { %v422_v25 = vadd.f32 %v421_v23, %v403_v24 }
 0x59e   :  { %761 = vtanh.f32 %v422_v25 }
 0x5a8   :  { %v762_v26 = vpop.eup %761 }
 0x5a9   :  { %432 = vperm.xlu1 %727, %v762_v26   ;;  %427 = vperm.xlu0 %726, %v762_v26  }
 0x5ad   :  { %728 = vset.pattern.permute.xlu1 %v838_v14 }
 0x5ae   :  { %438 = vperm.xlu1 %728, %v762_v26  }
 0x5b2   :  { %729 = vset.pattern.permute.xlu1 %v840_v30 }
 0x628   :  { %v433_v27 = vpop.permute.xlu1 %432  ;;  %v428_v28 = vpop.permute.xlu0 %427 }
 0x629   :  { %v435_v29 = vmul.f32 %v433_v27, %v903_v32  ;;  %v430_v31 = vmul.f32 %v428_v28, %v896_v16 }
 0x62b   :  { %v436_v35 = vadd.f32 %v435_v29, %v430_v31 }
 0x62d   :  { %v439_v34 = vpop.permute.xlu1 %438 }
 0x62e   :  { %v441_v36 = vmul.f32 %v439_v34, %v906_v33 }
 0x630   :  { %v442_v37 = vadd.f32 %v441_v36, %v436_v35  ;;  %v529_v35 = vld [vmem:[#allocation2 + $0xb] sm:$0x1] }
 0x632   :  { %v443_v39 = vadd.f32 %v442_v37, %v424_v38 }
 0x634   :  { %763 = vtanh.f32 %v443_v39 }
 0x63e   :  { %v764_v40 = vpop.eup %763 }
 0x63f   :  { %453 = vperm.xlu1 %729, %v764_v40   ;;  %448 = vperm.xlu0 %726, %v764_v40  }
 0x643   :  { %730 = vset.pattern.permute.xlu0 %v838_v14  ;;  %731 = vset.pattern.permute.xlu1 %v839_v15 }
 0x644   :  { %459 = vperm.xlu0 %730, %v764_v40  }
 0x6be   :  { %v454_v41 = vpop.permute.xlu1 %453  ;;  %v449_v42 = vpop.permute.xlu0 %448 }
 0x6bf   :  { %v456_v43 = vmul.f32 %v454_v41, %v903_v32  ;;  %v451_v44 = vmul.f32 %v449_v42, %v896_v16 }
 0x6c1   :  { %v457_v46 = vadd.f32 %v456_v43, %v451_v44 }
 0x6c3   :  { %v460_v45 = vpop.permute.xlu0 %459 }
 0x6c4   :  { %v462_v47 = vmul.f32 %v460_v45, %v906_v33 }
 0x6c6   :  { %v463_v48 = vadd.f32 %v462_v47, %v457_v46  ;;  %v550_v46 = vld [vmem:[#allocation2 + $0xc] sm:$0x1] }
 0x6c8   :  { %v464_v50 = vadd.f32 %v463_v48, %v445_v49 }
 0x6ca   :  { %765 = vtanh.f32 %v464_v50 }
 0x6d4   :  { %v766_v51 = vpop.eup %765 }
 0x6d5   :  { %480 = vperm.xlu0 %730, %v766_v51   ;;  %469 = vperm.xlu1 %731, %v766_v51  }
 0x6d9   :  { %732 = vset.pattern.permute.xlu1 %v840_v30  ;;  %734 = vset.pattern.permute.xlu0 %v840_v30 }
 0x6da   :  { %474 = vperm.xlu1 %732, %v766_v51  }
 0x6de   :  { %733 = vset.pattern.permute.xlu1 %v839_v15 }
 0x754   :  { %v470_v52 = vpop.permute.xlu1 %469  ;;  %v481_v53 = vpop.permute.xlu0 %480 }
 0x755   :  { %v472_v55 = vmul.f32 %v470_v52, %v896_v16  ;;  %v483_v57 = vmul.f32 %v481_v53, %v906_v33 }
 0x759   :  { %v475_v54 = vpop.permute.xlu1 %474 }
 0x75a   :  { %v477_v56 = vmul.f32 %v475_v54, %v903_v32 }
 0x75c   :  { %v478_v58 = vadd.f32 %v477_v56, %v472_v55 }
 0x75e   :  { %v484_v59 = vadd.f32 %v483_v57, %v478_v58  ;;  %v571_v57 = vld [vmem:[#allocation2 + $0xd] sm:$0x1] }
 0x760   :  { %v485_v61 = vadd.f32 %v484_v59, %v466_v60 }
 0x762   :  { %767 = vtanh.f32 %v485_v61 }
 0x76c   :  { %v768_v62 = vpop.eup %767 }
 0x76d   :  { %495 = vperm.xlu0 %734, %v768_v62   ;;  %490 = vperm.xlu1 %733, %v768_v62  }
 0x771   :  { %735 = vset.pattern.permute.xlu1 %v838_v14 }
 0x772   :  { %501 = vperm.xlu1 %735, %v768_v62  }
 0x776   :  { %736 = vset.pattern.permute.xlu1 %v839_v15 }
 0x7ec   :  { %v496_v63 = vpop.permute.xlu0 %495  ;;  %v491_v0 = vpop.permute.xlu1 %490 }
 0x7ed   :  { %v498_v1 = vmul.f32 %v496_v63, %v903_v32  ;;  %v493_v2 = vmul.f32 %v491_v0, %v896_v16 }
 0x7ef   :  { %v499_v4 = vadd.f32 %v498_v1, %v493_v2 }
 0x7f1   :  { %v502_v3 = vpop.permute.xlu1 %501 }
 0x7f2   :  { %v504_v5 = vmul.f32 %v502_v3, %v906_v33  ;;  %v592_v3 = vld [vmem:[#allocation2 + $0xe] sm:$0x1] }
 0x7f4   :  { %v505_v6 = vadd.f32 %v504_v5, %v499_v4 }
 0x7f6   :  { %v506_v8 = vadd.f32 %v505_v6, %v487_v7 }
 0x7f8   :  { %769 = vtanh.f32 %v506_v8 }
 0x802   :  { %v770_v9 = vpop.eup %769 }
 0x803   :  { %516 = vperm.xlu0 %734, %v770_v9   ;;  %511 = vperm.xlu1 %736, %v770_v9  }
 0x807   :  { %737 = vset.pattern.permute.xlu1 %v838_v14  ;;  %738 = vset.pattern.permute.xlu0 %v839_v15 }
 0x808   :  { %522 = vperm.xlu1 %737, %v770_v9  }
 0x80c   :  { %739 = vset.pattern.permute.xlu1 %v840_v30 }
 0x882   :  { %v517_v10 = vpop.permute.xlu0 %516  ;;  %v512_v11 = vpop.permute.xlu1 %511 }
 0x883   :  { %v519_v12 = vmul.f32 %v517_v10, %v903_v32  ;;  %v514_v13 = vmul.f32 %v512_v11, %v896_v16 }
 0x885   :  { %v520_v18 = vadd.f32 %v519_v12, %v514_v13  ;;  %v613_v13 = vld [vmem:[#allocation2 + $0xf] sm:$0x1] }
 0x887   :  { %v523_v17 = vpop.permute.xlu1 %522 }
 0x888   :  { %v525_v19 = vmul.f32 %v523_v17, %v906_v33 }
 0x88a   :  { %v526_v20 = vadd.f32 %v525_v19, %v520_v18  ;;  %v34_v19 = vld [vmem:[#allocation3 + $0x9] sm:$0x1] }
 0x88c   :  { %v527_v22 = vadd.f32 %v526_v20, %v508_v21 }
 0x88e   :  { %771 = vtanh.f32 %v527_v22  ;;  %v35_v22 = vld [vmem:[#allocation3 + $0xa] sm:$0x1] }
 0x898   :  { %v772_v23 = vpop.eup %771 }
 0x899   :  { %537 = vperm.xlu1 %739, %v772_v23   ;;  %532 = vperm.xlu0 %738, %v772_v23  }
 0x89d   :  { %740 = vset.pattern.permute.xlu1 %v838_v14 }
 0x89e   :  { %543 = vperm.xlu1 %740, %v772_v23  }
 0x8a2   :  { %741 = vset.pattern.permute.xlu1 %v840_v30 }
 0x918   :  { %v538_v24 = vpop.permute.xlu1 %537  ;;  %v533_v25 = vpop.permute.xlu0 %532 }
 0x919   :  { %v540_v26 = vmul.f32 %v538_v24, %v903_v32  ;;  %v535_v27 = vmul.f32 %v533_v25, %v896_v16 }
 0x91b   :  { %v541_v29 = vadd.f32 %v540_v26, %v535_v27 }
 0x91d   :  { %v544_v28 = vpop.permute.xlu1 %543 }
 0x91e   :  { %v546_v31 = vmul.f32 %v544_v28, %v906_v33 }
 0x920   :  { %v547_v34 = vadd.f32 %v546_v31, %v541_v29 }
 0x922   :  { %v548_v36 = vadd.f32 %v547_v34, %v529_v35 }
 0x924   :  { %773 = vtanh.f32 %v548_v36 }
 0x92e   :  { %v774_v37 = vpop.eup %773 }
 0x92f   :  { %558 = vperm.xlu1 %741, %v774_v37   ;;  %553 = vperm.xlu0 %738, %v774_v37  }
 0x933   :  { %742 = vset.pattern.permute.xlu0 %v838_v14  ;;  %743 = vset.pattern.permute.xlu1 %v839_v15 }
 0x934   :  { %564 = vperm.xlu0 %742, %v774_v37  }
 0x9ae   :  { %v559_v38 = vpop.permute.xlu1 %558  ;;  %v554_v39 = vpop.permute.xlu0 %553 }
 0x9af   :  { %v561_v40 = vmul.f32 %v559_v38, %v903_v32  ;;  %v556_v41 = vmul.f32 %v554_v39, %v896_v16 }
 0x9b1   :  { %v562_v43 = vadd.f32 %v561_v40, %v556_v41 }
 0x9b3   :  { %v565_v42 = vpop.permute.xlu0 %564 }
 0x9b4   :  { %v567_v44 = vmul.f32 %v565_v42, %v906_v33 }
 0x9b6   :  { %v568_v45 = vadd.f32 %v567_v44, %v562_v43 }
 0x9b8   :  { %v569_v47 = vadd.f32 %v568_v45, %v550_v46 }
 0x9ba   :  { %775 = vtanh.f32 %v569_v47 }
 0x9c4   :  { %v776_v48 = vpop.eup %775 }
 0x9c5   :  { %585 = vperm.xlu0 %742, %v776_v48   ;;  %574 = vperm.xlu1 %743, %v776_v48  }
 0x9c9   :  { %744 = vset.pattern.permute.xlu1 %v840_v30  ;;  %746 = vset.pattern.permute.xlu0 %v840_v30 }
 0x9ca   :  { %579 = vperm.xlu1 %744, %v776_v48  }
 0x9ce   :  { %745 = vset.pattern.permute.xlu1 %v839_v15 }
 0xa44   :  { %v575_v49 = vpop.permute.xlu1 %574  ;;  %v586_v50 = vpop.permute.xlu0 %585 }
 0xa45   :  { %v577_v52 = vmul.f32 %v575_v49, %v896_v16  ;;  %v588_v54 = vmul.f32 %v586_v50, %v906_v33 }
 0xa49   :  { %v580_v51 = vpop.permute.xlu1 %579 }
 0xa4a   :  { %v582_v53 = vmul.f32 %v580_v51, %v903_v32 }
 0xa4c   :  { %v583_v55 = vadd.f32 %v582_v53, %v577_v52 }
 0xa4e   :  { %v589_v56 = vadd.f32 %v588_v54, %v583_v55 }
 0xa50   :  { %v590_v58 = vadd.f32 %v589_v56, %v571_v57 }
 0xa52   :  { %777 = vtanh.f32 %v590_v58 }
 0xa5c   :  { %v778_v59 = vpop.eup %777 }
 0xa5d   :  { %600 = vperm.xlu0 %746, %v778_v59   ;;  %595 = vperm.xlu1 %745, %v778_v59  }
 0xa61   :  { %747 = vset.pattern.permute.xlu1 %v838_v14 }
 0xa62   :  { %606 = vperm.xlu1 %747, %v778_v59  }
 0xa66   :  { %748 = vset.pattern.permute.xlu1 %v839_v15 }
 0xadc   :  { %v601_v30 = vpop.permute.xlu0 %600  ;;  %v596_v60 = vpop.permute.xlu1 %595 }
 0xadd   :  { %v603_v61 = vmul.f32 %v601_v30, %v903_v32  ;;  %v598_v62 = vmul.f32 %v596_v60, %v896_v16 }
 0xadf   :  { %v604_v0 = vadd.f32 %v603_v61, %v598_v62 }
 0xae1   :  { %v607_v63 = vpop.permute.xlu1 %606 }
 0xae2   :  { %v609_v1 = vmul.f32 %v607_v63, %v906_v33 }
 0xae4   :  { %v610_v2 = vadd.f32 %v609_v1, %v604_v0 }
 0xae6   :  { %v611_v4 = vadd.f32 %v610_v2, %v592_v3 }
 0xae8   :  { %779 = vtanh.f32 %v611_v4 }
 0xaf2   :  { %v780_v5 = vpop.eup %779 }
 0xaf3   :  { %621 = vperm.xlu0 %746, %v780_v5   ;;  %616 = vperm.xlu1 %748, %v780_v5  }
 0xaf7   :  { %749 = vset.pattern.permute.xlu1 %v838_v14  ;;  %750 = vset.pattern.permute.xlu0 %v838_v14 }
 0xaf8   :  { %627 = vperm.xlu1 %749, %v780_v5  }
 0xb72   :  { %v622_v15 = vpop.permute.xlu0 %621  ;;  %v617_v6 = vpop.permute.xlu1 %616 }
 0xb73   :  { %v624_v7 = vmul.f32 %v622_v15, %v903_v32  ;;  %v619_v8 = vmul.f32 %v617_v6, %v896_v16 }
 0xb75   :  { %v625_v10 = vadd.f32 %v624_v7, %v619_v8 }
 0xb77   :  { %v628_v9 = vpop.permute.xlu1 %627 }
 0xb78   :  { %v630_v11 = vmul.f32 %v628_v9, %v906_v33 }
 0xb7a   :  { %v631_v12 = vadd.f32 %v630_v11, %v625_v10 }
 0xb7c   :  { %v632_v17 = vadd.f32 %v631_v12, %v613_v13 }
 0xb7e   :  { %781 = vtanh.f32 %v632_v17 }
 0xb88   :  { %v782_v18 = vpop.eup %781 }
 0xb89   :  { %v634_v20 = vmax.f32 %v782_v18, 0.0 }
 0xb8b   :  { %v635_v14 = vmul.f32 %v634_v20, %v34_v19 }
 0xb8d   :  { %v637_v21 = vsel %vm636_vm4, %v635_v14, 0.0 }
 0xb8e   :  { %638 = vadd.xlane.f32.xlu0 %v637_v21 }
 0xc1b   :  { %v639_v23 = vpop.xlane.xlu0 %638 }
 0xc1c   :  { %v640_v32 = vadd.f32 %v639_v23, %v35_v22 }
 0xc1e   :  { %v674_v24 = vmul.f32 -1.442695, %v640_v32 }
 0xc20   :  { %783 = vpow2.f32 %v674_v24 }
 0xc2a   :  { %v784_v16 = vpop.eup %783 }
 0xc2b   :  { %v644_v25 = vadd.f32 1.0, %v784_v16 }
 0xc2d   :  { %785 = vrcp.f32 %v644_v25 }
 0xc37   :  { %v786_v33 = vpop.eup %785 }
 0xc38   :  { %648 = vst.msk [vmem:[#allocation6] sm:$0x1] %vm647_vm5, %v786_v33 }
 0xc39   :  { %820 = shalt.err (!%p817_p12)
}
 0xc3a   :  { %s821_s10 = scalar_lea.hbm %s1001_s3, 16 }
 0xc3b   :  { %p822_p13 = scmp.ne.s32.totalorder %s1001_s3, %s821_s10  ;;  %p825_p0 = scmp.lt.u32.totalorder %s821_s10, %s1001_s3 }
 0xc3d   :  { %p827_p1 = pnand %p825_p0, %p822_p13 }
 0xc3f   :  { %830 = shalt.err (!%p827_p1)
}
 0xc40   :  { %658 = dma.vmem_to_hbm [thread:$0]  %s656_s5, 16, %s1001_s3, [#allocation5]  }
 0xc41   :  { %833 = dma.done.wait [#allocation5], 16  }
 0xc42   :  { %834 = vsyncadd [#allocation5], 4294967280 }
 0xc43   :  { %662 = vsyncpa [#allocation4], 1 }
 0xc44   :  { %663 = vsyncpa [#allocation5], 1 }

</bundles_post_ra>
